<compile_context>
chip_gen: v6e
topology: v6e:2x2x1
jax: 0.10.0
libtpu: 0.0.40
codegen_flags: <defaults>
</compile_context>

<pallas_src>
import functools

import jax
import jax.numpy as jnp
from jax import lax
from jax.experimental import pallas as pl
from jax.experimental.pallas import tpu as pltpu


# ---------------------------------------------------------------------------
# In-kernel helpers
# ---------------------------------------------------------------------------
def _scaled_adj(a):
    """Return A_s = D_out^-1/2 @ A @ D_in^-1/2.

    The DGL GraphConv (norm='both', no self-loops) propagation matrix is
    A_hat = D_in^-1/2 @ A^T @ D_out^-1/2 = A_s^T, so A_hat @ X is done below with
    a transposed-contraction dot_general (no explicit transpose needed).
    Zero degrees are clamped to 1 (isolated nodes pass zero messages).
    """
    out_deg = jnp.maximum(jnp.sum(a, axis=1, keepdims=True), 1.0)  # (N, 1) row sums
    in_deg = jnp.maximum(jnp.sum(a, axis=0, keepdims=True), 1.0)   # (1, N) col sums
    return a * lax.rsqrt(out_deg) * lax.rsqrt(in_deg)


def _agg(a_scaled, x):
    """A_hat @ x == A_scaled^T @ x, kept on the MXU via dimension_numbers."""
    return lax.dot_general(
        a_scaled, x,
        dimension_numbers=(((0,), (0,)), ((), ())),
        preferred_element_type=jnp.float32,
    )


def _gcn2(a, x, w1, b1, w2, b2):
    """h2 = relu(A_hat @ relu(A_hat @ x @ W1 + b1) @ W2 + b2)."""
    a_s = _scaled_adj(a)
    # Layer 1: aggregate first -> (A @ X) @ W1  (cheaper when in_feats <= hidden_dim).
    h1 = jnp.maximum(
        jnp.dot(_agg(a_s, x), w1, preferred_element_type=jnp.float32) + b1, 0.0)
    # Layer 2 (in == out feats): aggregate first as well.
    h2 = jnp.maximum(
        jnp.dot(_agg(a_s, h1), w2, preferred_element_type=jnp.float32) + b2, 0.0)
    return h2


def _zscore_minmax(v, hdim):
    """torch: (v - v.mean()) / v.std()  (unbiased std, ddof=1), then min-max to [0, 1]."""
    mu = jnp.sum(v, axis=1, keepdims=True) * (1.0 / hdim)
    var = jnp.sum((v - mu) ** 2, axis=1, keepdims=True) * (1.0 / (hdim - 1))
    v = (v - mu) * lax.rsqrt(var)
    vmin = jnp.min(v, axis=1, keepdims=True)
    vmax = jnp.max(v, axis=1, keepdims=True)
    # NOTE: like the torch reference, this produces NaN for a constant embedding
    # (vmax == vmin); no epsilon is added so the module semantics are preserved.
    return (v - vmin) * pl.reciprocal(vmax - vmin, approx=True)


# ---------------------------------------------------------------------------
# Fused kernel: 2-layer GCN (apig) + 2-layer GCN (fcg) + readout + attention + classifier
# ---------------------------------------------------------------------------
def _fused_kernel(a_api_ref, x_api_ref, wa1_ref, ba1_ref, wa2_ref, ba2_ref,
                  a_fcg_ref, x_fcg_ref, wf1_ref, bf1_ref, wf2_ref, bf2_ref,
                  wc_ref, bc_ref, out_ref):
    hdim = wa1_ref.shape[1]

    # Both GCN towers; intermediates stay in VMEM (never written back to HBM).
    h_a2 = _gcn2(a_api_ref[...], x_api_ref[...],
                 wa1_ref[...], ba1_ref[...], wa2_ref[...], ba2_ref[...])
    h_f2 = _gcn2(a_fcg_ref[...], x_fcg_ref[...],
                 wf1_ref[...], bf1_ref[...], wf2_ref[...], bf2_ref[...])

    apig_emb = jnp.mean(h_a2, axis=0, keepdims=True)  # dgl.mean_nodes -> (1, H)
    fcg_emb = jnp.max(h_f2, axis=0, keepdims=True)    # dgl.max_nodes  -> (1, H)

    apig_emb = _zscore_minmax(apig_emb, hdim)
    fcg_emb = _zscore_minmax(fcg_emb, hdim)

    # Attention: softmax(dim=0) over a length-1 logit is exactly 1.0, so
    # attn_applied == apig_emb + fcg_emb (the nn.Linear(H, 1) parameters are dead
    # in this forward pass and are not loaded).
    emb = apig_emb + fcg_emb

    # nn.Dropout(0.5): identity in eval mode.
    out_ref[...] = (
        jnp.dot(emb, wc_ref[...], preferred_element_type=jnp.float32) + bc_ref[...]
    )


# ---------------------------------------------------------------------------
# Wrapper
# ---------------------------------------------------------------------------
@functools.partial(jax.jit)
def multi_graph_classifier_forward(params, apig_adj, apig_feat, fcg_adj, fcg_feat):
    num_classes = params["w_cls"].shape[1]
    vmem = pl.BlockSpec(memory_space=pltpu.MemorySpace.VMEM)
    out = pl.pallas_call(
        _fused_kernel,
        out_shape=jax.ShapeDtypeStruct((1, num_classes), jnp.float32),
        in_specs=[vmem] * 14,
        out_specs=vmem,
        compiler_params=pltpu.CompilerParams(vmem_limit_bytes=32 * 1024 * 1024),
    )(apig_adj, apig_feat,
      params["w_a1"], params["b_a1"], params["w_a2"], params["b_a2"],
      fcg_adj, fcg_feat,
      params["w_f1"], params["b_f1"], params["w_f2"], params["b_f2"],
      params["w_cls"], params["b_cls"])
    return out[0]  # shape [num_classes], matching the 1-D torch output


def init_params(key, apig_dim, fcg_dim, hidden_dim, num_classes):
    ks = jax.random.split(key, 10)

    def glorot(k, shape):
        lim = (6.0 / (shape[0] + shape[1])) ** 0.5
        return jax.random.uniform(k, shape, jnp.float32, -lim, lim)

    return {
        "w_a1": glorot(ks[0], (apig_dim, hidden_dim)),
        "b_a1": jnp.zeros((1, hidden_dim), jnp.float32),
        "w_a2": glorot(ks[1], (hidden_dim, hidden_dim)),
        "b_a2": jnp.zeros((1, hidden_dim), jnp.float32),
        "w_f1": glorot(ks[2], (fcg_dim, hidden_dim)),
        "b_f1": jnp.zeros((1, hidden_dim), jnp.float32),
        "w_f2": glorot(ks[3], (hidden_dim, hidden_dim)),
        "b_f2": jnp.zeros((1, hidden_dim), jnp.float32),
        # Attention Linear(H, 1) params kept for parity with the torch module, but its
        # length-1 softmax is exactly 1.0, so they do not affect the forward pass.
        "w_attn": glorot(ks[4], (hidden_dim, 1)),
        "b_attn": 0.01 * jnp.ones((1, 1), jnp.float32),
        "w_cls": glorot(ks[5], (hidden_dim, num_classes)),
        "b_cls": 0.01 * jnp.ones((1, num_classes), jnp.float32),
    }


if __name__ == "__main__":
    key = jax.random.PRNGKey(0)
    k_adj_a, k_adj_f, k_feat_a, k_feat_f, k_params = jax.random.split(key, 5)

    # small synthetic problem sizes (consistent with the module)
    n_apig, apig_dim = 16, 8
    n_fcg, fcg_dim = 24, 12
    hidden_dim, num_classes = 32, 4

    apig_adj = jax.random.bernoulli(k_adj_a, 0.3, (n_apig, n_apig)).astype(jnp.float32)
    fcg_adj = jax.random.bernoulli(k_adj_f, 0.3, (n_fcg, n_fcg)).astype(jnp.float32)
    apig_feat = jax.random.normal(k_feat_a, (n_apig, apig_dim), jnp.float32)
    fcg_feat = jax.random.normal(k_feat_f, (n_fcg, fcg_dim), jnp.float32)

    params = init_params(k_params, apig_dim, fcg_dim, hidden_dim, num_classes)

    out = multi_graph_classifier_forward(params, apig_adj, apig_feat, fcg_adj, fcg_feat)
    out = jax.block_until_ready(out)

    # mirrors the module's NaN check on the output logits
    assert out.shape == (num_classes,)
    assert not bool(jnp.any(jnp.isnan(out)))
    print("KERNEL_OK")
</pallas_src>

<mosaic_0001>
module attributes {stable_mosaic.version = 11 : i64} {
  func.func @_fused_kernel(%arg0: memref<16x16xf32, #tpu.memory_space<vmem>>, %arg1: memref<16x8xf32, #tpu.memory_space<vmem>>, %arg2: memref<8x32xf32, #tpu.memory_space<vmem>>, %arg3: memref<1x32xf32, #tpu.memory_space<vmem>>, %arg4: memref<32x32xf32, #tpu.memory_space<vmem>>, %arg5: memref<1x32xf32, #tpu.memory_space<vmem>>, %arg6: memref<24x24xf32, #tpu.memory_space<vmem>>, %arg7: memref<24x12xf32, #tpu.memory_space<vmem>>, %arg8: memref<12x32xf32, #tpu.memory_space<vmem>>, %arg9: memref<1x32xf32, #tpu.memory_space<vmem>>, %arg10: memref<32x32xf32, #tpu.memory_space<vmem>>, %arg11: memref<1x32xf32, #tpu.memory_space<vmem>>, %arg12: memref<32x4xf32, #tpu.memory_space<vmem>>, %arg13: memref<1x4xf32, #tpu.memory_space<vmem>>, %arg14: memref<1x4xf32, #tpu.memory_space<vmem>>) attributes {dimension_semantics = [], scalar_prefetch = 0 : i64, scratch_operands = 0 : i64, tpu.core_type = #tpu.core_type<tc>} {
    %c0 = arith.constant 0 : index
    %c0_0 = arith.constant 0 : index
    %0 = vector.load %arg0[%c0, %c0_0] : memref<16x16xf32, #tpu.memory_space<vmem>>, vector<16x16xf32>
    %c0_1 = arith.constant 0 : index
    %c0_2 = arith.constant 0 : index
    %1 = vector.load %arg1[%c0_1, %c0_2] : memref<16x8xf32, #tpu.memory_space<vmem>>, vector<16x8xf32>
    %c0_3 = arith.constant 0 : index
    %c0_4 = arith.constant 0 : index
    %2 = vector.load %arg2[%c0_3, %c0_4] : memref<8x32xf32, #tpu.memory_space<vmem>>, vector<8x32xf32>
    %c0_5 = arith.constant 0 : index
    %c0_6 = arith.constant 0 : index
    %3 = vector.load %arg3[%c0_5, %c0_6] : memref<1x32xf32, #tpu.memory_space<vmem>>, vector<1x32xf32>
    %c0_7 = arith.constant 0 : index
    %c0_8 = arith.constant 0 : index
    %4 = vector.load %arg4[%c0_7, %c0_8] : memref<32x32xf32, #tpu.memory_space<vmem>>, vector<32x32xf32>
    %c0_9 = arith.constant 0 : index
    %c0_10 = arith.constant 0 : index
    %5 = vector.load %arg5[%c0_9, %c0_10] : memref<1x32xf32, #tpu.memory_space<vmem>>, vector<1x32xf32>
    %cst = arith.constant dense<0.000000e+00> : vector<16xf32>
    %6 = vector.multi_reduction <add>, %0, %cst [1] : vector<16x16xf32> to vector<16xf32>
    %7 = vector.shape_cast %6 : vector<16xf32> to vector<16x1xf32>
    %cst_11 = arith.constant 1.000000e+00 : f32
    %8 = vector.broadcast %cst_11 : f32 to vector<16x1xf32>
    %9 = arith.maximumf %7, %8 : vector<16x1xf32>
    %cst_12 = arith.constant dense<0.000000e+00> : vector<16xf32>
    %10 = vector.multi_reduction <add>, %0, %cst_12 [0] : vector<16x16xf32> to vector<16xf32>
    %11 = vector.shape_cast %10 : vector<16xf32> to vector<1x16xf32>
    %cst_13 = arith.constant 1.000000e+00 : f32
    %12 = vector.broadcast %cst_13 : f32 to vector<1x16xf32>
    %13 = arith.maximumf %11, %12 : vector<1x16xf32>
    %14 = math.rsqrt %9 : vector<16x1xf32>
    %15 = vector.broadcast %14 : vector<16x1xf32> to vector<16x16xf32>
    %16 = arith.mulf %0, %15 : vector<16x16xf32>
    %17 = math.rsqrt %13 : vector<1x16xf32>
    %18 = vector.broadcast %17 : vector<1x16xf32> to vector<16x16xf32>
    %19 = arith.mulf %16, %18 : vector<16x16xf32>
    %cst_14 = arith.constant dense<0.000000e+00> : vector<16x8xf32>
    %20 = tpu.matmul %19, %1, %cst_14 {dimension_numbers = #tpu.dot_dimension_numbers<[0], [0], [1], [1], [0, 1, 1, 1], [], []>} : vector<16x16xf32>, vector<16x8xf32>, vector<16x8xf32> -> vector<16x8xf32>
    %cst_15 = arith.constant dense<0.000000e+00> : vector<16x32xf32>
    %21 = tpu.matmul %20, %2, %cst_15 {dimension_numbers = #tpu.dot_dimension_numbers<[1], [0], [0], [1], [0, 0, 1, 1], [], []>} : vector<16x8xf32>, vector<8x32xf32>, vector<16x32xf32> -> vector<16x32xf32>
    %22 = vector.broadcast %3 : vector<1x32xf32> to vector<16x32xf32>
    %23 = arith.addf %21, %22 : vector<16x32xf32>
    %cst_16 = arith.constant 0.000000e+00 : f32
    %24 = vector.broadcast %cst_16 : f32 to vector<16x32xf32>
    %25 = arith.maximumf %23, %24 : vector<16x32xf32>
    %cst_17 = arith.constant dense<0.000000e+00> : vector<16x32xf32>
    %26 = tpu.matmul %19, %25, %cst_17 {dimension_numbers = #tpu.dot_dimension_numbers<[0], [0], [1], [1], [0, 1, 1, 1], [], []>} : vector<16x16xf32>, vector<16x32xf32>, vector<16x32xf32> -> vector<16x32xf32>
    %cst_18 = arith.constant dense<0.000000e+00> : vector<16x32xf32>
    %27 = tpu.matmul %26, %4, %cst_18 {dimension_numbers = #tpu.dot_dimension_numbers<[1], [0], [0], [1], [0, 0, 1, 1], [], []>} : vector<16x32xf32>, vector<32x32xf32>, vector<16x32xf32> -> vector<16x32xf32>
    %28 = vector.broadcast %5 : vector<1x32xf32> to vector<16x32xf32>
    %29 = arith.addf %27, %28 : vector<16x32xf32>
    %cst_19 = arith.constant 0.000000e+00 : f32
    %30 = vector.broadcast %cst_19 : f32 to vector<16x32xf32>
    %31 = arith.maximumf %29, %30 : vector<16x32xf32>
    %c0_20 = arith.constant 0 : index
    %c0_21 = arith.constant 0 : index
    %32 = vector.load %arg6[%c0_20, %c0_21] : memref<24x24xf32, #tpu.memory_space<vmem>>, vector<24x24xf32>
    %c0_22 = arith.constant 0 : index
    %c0_23 = arith.constant 0 : index
    %33 = vector.load %arg7[%c0_22, %c0_23] : memref<24x12xf32, #tpu.memory_space<vmem>>, vector<24x12xf32>
    %c0_24 = arith.constant 0 : index
    %c0_25 = arith.constant 0 : index
    %34 = vector.load %arg8[%c0_24, %c0_25] : memref<12x32xf32, #tpu.memory_space<vmem>>, vector<12x32xf32>
    %c0_26 = arith.constant 0 : index
    %c0_27 = arith.constant 0 : index
    %35 = vector.load %arg9[%c0_26, %c0_27] : memref<1x32xf32, #tpu.memory_space<vmem>>, vector<1x32xf32>
    %c0_28 = arith.constant 0 : index
    %c0_29 = arith.constant 0 : index
    %36 = vector.load %arg10[%c0_28, %c0_29] : memref<32x32xf32, #tpu.memory_space<vmem>>, vector<32x32xf32>
    %c0_30 = arith.constant 0 : index
    %c0_31 = arith.constant 0 : index
    %37 = vector.load %arg11[%c0_30, %c0_31] : memref<1x32xf32, #tpu.memory_space<vmem>>, vector<1x32xf32>
    %cst_32 = arith.constant dense<0.000000e+00> : vector<24xf32>
    %38 = vector.multi_reduction <add>, %32, %cst_32 [1] : vector<24x24xf32> to vector<24xf32>
    %39 = vector.shape_cast %38 : vector<24xf32> to vector<24x1xf32>
    %cst_33 = arith.constant 1.000000e+00 : f32
    %40 = vector.broadcast %cst_33 : f32 to vector<24x1xf32>
    %41 = arith.maximumf %39, %40 : vector<24x1xf32>
    %cst_34 = arith.constant dense<0.000000e+00> : vector<24xf32>
    %42 = vector.multi_reduction <add>, %32, %cst_34 [0] : vector<24x24xf32> to vector<24xf32>
    %43 = vector.shape_cast %42 : vector<24xf32> to vector<1x24xf32>
    %cst_35 = arith.constant 1.000000e+00 : f32
    %44 = vector.broadcast %cst_35 : f32 to vector<1x24xf32>
    %45 = arith.maximumf %43, %44 : vector<1x24xf32>
    %46 = math.rsqrt %41 : vector<24x1xf32>
    %47 = vector.broadcast %46 : vector<24x1xf32> to vector<24x24xf32>
    %48 = arith.mulf %32, %47 : vector<24x24xf32>
    %49 = math.rsqrt %45 : vector<1x24xf32>
    %50 = vector.broadcast %49 : vector<1x24xf32> to vector<24x24xf32>
    %51 = arith.mulf %48, %50 : vector<24x24xf32>
    %cst_36 = arith.constant dense<0.000000e+00> : vector<24x12xf32>
    %52 = tpu.matmul %51, %33, %cst_36 {dimension_numbers = #tpu.dot_dimension_numbers<[0], [0], [1], [1], [0, 1, 1, 1], [], []>} : vector<24x24xf32>, vector<24x12xf32>, vector<24x12xf32> -> vector<24x12xf32>
    %cst_37 = arith.constant dense<0.000000e+00> : vector<24x32xf32>
    %53 = tpu.matmul %52, %34, %cst_37 {dimension_numbers = #tpu.dot_dimension_numbers<[1], [0], [0], [1], [0, 0, 1, 1], [], []>} : vector<24x12xf32>, vector<12x32xf32>, vector<24x32xf32> -> vector<24x32xf32>
    %54 = vector.broadcast %35 : vector<1x32xf32> to vector<24x32xf32>
    %55 = arith.addf %53, %54 : vector<24x32xf32>
    %cst_38 = arith.constant 0.000000e+00 : f32
    %56 = vector.broadcast %cst_38 : f32 to vector<24x32xf32>
    %57 = arith.maximumf %55, %56 : vector<24x32xf32>
    %cst_39 = arith.constant dense<0.000000e+00> : vector<24x32xf32>
    %58 = tpu.matmul %51, %57, %cst_39 {dimension_numbers = #tpu.dot_dimension_numbers<[0], [0], [1], [1], [0, 1, 1, 1], [], []>} : vector<24x24xf32>, vector<24x32xf32>, vector<24x32xf32> -> vector<24x32xf32>
    %cst_40 = arith.constant dense<0.000000e+00> : vector<24x32xf32>
    %59 = tpu.matmul %58, %36, %cst_40 {dimension_numbers = #tpu.dot_dimension_numbers<[1], [0], [0], [1], [0, 0, 1, 1], [], []>} : vector<24x32xf32>, vector<32x32xf32>, vector<24x32xf32> -> vector<24x32xf32>
    %60 = vector.broadcast %37 : vector<1x32xf32> to vector<24x32xf32>
    %61 = arith.addf %59, %60 : vector<24x32xf32>
    %cst_41 = arith.constant 0.000000e+00 : f32
    %62 = vector.broadcast %cst_41 : f32 to vector<24x32xf32>
    %63 = arith.maximumf %61, %62 : vector<24x32xf32>
    %cst_42 = arith.constant dense<0.000000e+00> : vector<32xf32>
    %64 = vector.multi_reduction <add>, %31, %cst_42 [0] : vector<16x32xf32> to vector<32xf32>
    %65 = vector.shape_cast %64 : vector<32xf32> to vector<1x32xf32>
    %cst_43 = arith.constant 1.600000e+01 : f32
    %66 = vector.broadcast %cst_43 : f32 to vector<1x32xf32>
    %67 = arith.divf %65, %66 : vector<1x32xf32>
    %cst_44 = arith.constant dense<0xFF800000> : vector<32xf32>
    %68 = vector.multi_reduction <maximumf>, %63, %cst_44 [0] : vector<24x32xf32> to vector<32xf32>
    %69 = vector.shape_cast %68 : vector<32xf32> to vector<1x32xf32>
    %cst_45 = arith.constant dense<0.000000e+00> : vector<1xf32>
    %70 = vector.multi_reduction <add>, %67, %cst_45 [1] : vector<1x32xf32> to vector<1xf32>
    %71 = vector.shape_cast %70 : vector<1xf32> to vector<1x1xf32>
    %cst_46 = arith.constant 3.125000e-02 : f32
    %72 = vector.broadcast %cst_46 : f32 to vector<1x1xf32>
    %73 = arith.mulf %71, %72 : vector<1x1xf32>
    %74 = vector.broadcast %73 : vector<1x1xf32> to vector<1x32xf32>
    %75 = arith.subf %67, %74 : vector<1x32xf32>
    %76 = arith.mulf %75, %75 : vector<1x32xf32>
    %cst_47 = arith.constant dense<0.000000e+00> : vector<1xf32>
    %77 = vector.multi_reduction <add>, %76, %cst_47 [1] : vector<1x32xf32> to vector<1xf32>
    %78 = vector.shape_cast %77 : vector<1xf32> to vector<1x1xf32>
    %cst_48 = arith.constant 0.0322580636 : f32
    %79 = vector.broadcast %cst_48 : f32 to vector<1x1xf32>
    %80 = arith.mulf %78, %79 : vector<1x1xf32>
    %81 = vector.broadcast %73 : vector<1x1xf32> to vector<1x32xf32>
    %82 = arith.subf %67, %81 : vector<1x32xf32>
    %83 = math.rsqrt %80 : vector<1x1xf32>
    %84 = vector.broadcast %83 : vector<1x1xf32> to vector<1x32xf32>
    %85 = arith.mulf %82, %84 : vector<1x32xf32>
    %cst_49 = arith.constant dense<0x7F800000> : vector<1xf32>
    %86 = vector.multi_reduction <minimumf>, %85, %cst_49 [1] : vector<1x32xf32> to vector<1xf32>
    %87 = vector.shape_cast %86 : vector<1xf32> to vector<1x1xf32>
    %cst_50 = arith.constant dense<0xFF800000> : vector<1xf32>
    %88 = vector.multi_reduction <maximumf>, %85, %cst_50 [1] : vector<1x32xf32> to vector<1xf32>
    %89 = vector.shape_cast %88 : vector<1xf32> to vector<1x1xf32>
    %90 = vector.broadcast %87 : vector<1x1xf32> to vector<1x32xf32>
    %91 = arith.subf %85, %90 : vector<1x32xf32>
    %92 = arith.subf %89, %87 : vector<1x1xf32>
    %93 = tpu.reciprocal %92 {approx = true} : vector<1x1xf32> -> vector<1x1xf32>
    %94 = vector.broadcast %93 : vector<1x1xf32> to vector<1x32xf32>
    %95 = arith.mulf %91, %94 : vector<1x32xf32>
    %cst_51 = arith.constant dense<0.000000e+00> : vector<1xf32>
    %96 = vector.multi_reduction <add>, %69, %cst_51 [1] : vector<1x32xf32> to vector<1xf32>
    %97 = vector.shape_cast %96 : vector<1xf32> to vector<1x1xf32>
    %cst_52 = arith.constant 3.125000e-02 : f32
    %98 = vector.broadcast %cst_52 : f32 to vector<1x1xf32>
    %99 = arith.mulf %97, %98 : vector<1x1xf32>
    %100 = vector.broadcast %99 : vector<1x1xf32> to vector<1x32xf32>
    %101 = arith.subf %69, %100 : vector<1x32xf32>
    %102 = arith.mulf %101, %101 : vector<1x32xf32>
    %cst_53 = arith.constant dense<0.000000e+00> : vector<1xf32>
    %103 = vector.multi_reduction <add>, %102, %cst_53 [1] : vector<1x32xf32> to vector<1xf32>
    %104 = vector.shape_cast %103 : vector<1xf32> to vector<1x1xf32>
    %cst_54 = arith.constant 0.0322580636 : f32
    %105 = vector.broadcast %cst_54 : f32 to vector<1x1xf32>
    %106 = arith.mulf %104, %105 : vector<1x1xf32>
    %107 = vector.broadcast %99 : vector<1x1xf32> to vector<1x32xf32>
    %108 = arith.subf %69, %107 : vector<1x32xf32>
    %109 = math.rsqrt %106 : vector<1x1xf32>
    %110 = vector.broadcast %109 : vector<1x1xf32> to vector<1x32xf32>
    %111 = arith.mulf %108, %110 : vector<1x32xf32>
    %cst_55 = arith.constant dense<0x7F800000> : vector<1xf32>
    %112 = vector.multi_reduction <minimumf>, %111, %cst_55 [1] : vector<1x32xf32> to vector<1xf32>
    %113 = vector.shape_cast %112 : vector<1xf32> to vector<1x1xf32>
    %cst_56 = arith.constant dense<0xFF800000> : vector<1xf32>
    %114 = vector.multi_reduction <maximumf>, %111, %cst_56 [1] : vector<1x32xf32> to vector<1xf32>
    %115 = vector.shape_cast %114 : vector<1xf32> to vector<1x1xf32>
    %116 = vector.broadcast %113 : vector<1x1xf32> to vector<1x32xf32>
    %117 = arith.subf %111, %116 : vector<1x32xf32>
    %118 = arith.subf %115, %113 : vector<1x1xf32>
    %119 = tpu.reciprocal %118 {approx = true} : vector<1x1xf32> -> vector<1x1xf32>
    %120 = vector.broadcast %119 : vector<1x1xf32> to vector<1x32xf32>
    %121 = arith.mulf %117, %120 : vector<1x32xf32>
    %122 = arith.addf %95, %121 : vector<1x32xf32>
    %c0_57 = arith.constant 0 : index
    %c0_58 = arith.constant 0 : index
    %123 = vector.load %arg12[%c0_57, %c0_58] : memref<32x4xf32, #tpu.memory_space<vmem>>, vector<32x4xf32>
    %cst_59 = arith.constant dense<0.000000e+00> : vector<1x4xf32>
    %124 = tpu.matmul %122, %123, %cst_59 {dimension_numbers = #tpu.dot_dimension_numbers<[1], [0], [0], [1], [0, 0, 1, 1], [], []>} : vector<1x32xf32>, vector<32x4xf32>, vector<1x4xf32> -> vector<1x4xf32>
    %c0_60 = arith.constant 0 : index
    %c0_61 = arith.constant 0 : index
    %125 = vector.load %arg13[%c0_60, %c0_61] : memref<1x4xf32, #tpu.memory_space<vmem>>, vector<1x4xf32>
    %126 = arith.addf %124, %125 : vector<1x4xf32>
    %c0_62 = arith.constant 0 : index
    %c0_63 = arith.constant 0 : index
    %127 = vector.load %arg14[%c0_62, %c0_63] : memref<1x4xf32, #tpu.memory_space<vmem>>, vector<1x4xf32>
    tpu.vector_store %arg14[%c0_62, %c0_63], %126 {strides = array<i32>} : memref<1x4xf32, #tpu.memory_space<vmem>>, vector<1x4xf32>,
    return
  }
}

</mosaic_0001>

<bundles_post_ra>
// kernel: multi_graph_classifier_forward.1
= control target key start
LH: loop header
LB: loop body
LE: loop exit
PB: predicated region body
PF: predicated region fallthrough
CT: control target
= control target key end

     0   :  { %19 = vsyncpa [#allocation3], 0  ;;  %s1825_s0 = inlined_call_operand.hbm [shape: f32[16,16], index: 0, kind: input, shape index: {}]   ;;  %s1826_s1 = inlined_call_operand.vmem [shape: f32[16,8], index: 1, kind: input, shape index: {}]   ;;  %s1827_s2 = inlined_call_operand.hbm [shape: f32[8,32], index: 2, kind: input, shape index: {}]   ;;  %s1828_s3 = inlined_call_operand.hbm [shape: f32[1,32], index: 3, kind: input, shape index: {}]   ;;  %s1829_s4 = inlined_call_operand.vmem [shape: f32[32,32], index: 4, kind: input, shape index: {}]   ;;  %s1830_s5 = inlined_call_operand.hbm [shape: f32[1,32], index: 5, kind: input, shape index: {}]   ;;  %s1831_s6 = inlined_call_operand.vmem [shape: f32[24,24], index: 6, kind: input, shape index: {}]   ;;  %s1832_s7 = inlined_call_operand.vmem [shape: f32[24,12], index: 7, kind: input, shape index: {}]   ;;  %s1833_s8 = inlined_call_operand.hbm [shape: f32[12,32], index: 8, kind: input, shape index: {}]   ;;  %s1834_s9 = inlined_call_operand.hbm [shape: f32[1,32], index: 9, kind: input, shape index: {}]   ;;  %s1835_s10 = inlined_call_operand.vmem [shape: f32[32,32], index: 10, kind: input, shape index: {}]   ;;  %s1836_s11 = inlined_call_operand.hbm [shape: f32[1,32], index: 11, kind: input, shape index: {}]   ;;  %s1837_s12 = inlined_call_operand.vmem [shape: f32[32,4], index: 12, kind: input, shape index: {}]   ;;  %s1838_s13 = inlined_call_operand.hbm [shape: f32[1,4], index: 13, kind: input, shape index: {}]   ;;  %s1839_s14 = inlined_call_operand.hbm [shape: f32[1,4], index: 14, kind: output, shape index: {}]  }
   0x1   :  { %20 = vsyncpa [#allocation6], 0 }
   0x2   :  { %21 = vsyncpa [#allocation9], 0 }
   0x3   :  { %22 = vsyncpa [#allocation12], 0 }
   0x4   :  { %23 = vsyncpa [#allocation15], 0 }
   0x5   :  { %24 = vsyncpa [#allocation4], 0  ;;  %s1562_s29 = smov [#allocation5]   ;;  %s1563_s15 = smov [#allocation8]  }
   0x6   :  { %s45_s30 = sshll.u32 %s1562_s29, 4  ;;  %s67_s16 = sshll.u32 %s1563_s15, 4  ;;  %s46_s30 = int_to_ptr.vmem [resolvable:$true] %s45_s30  ;;  %s68_s16 = int_to_ptr.vmem [resolvable:$true] %s67_s16 }
   0x7   :  { %s1378_s17 = scalar_lea.vmem %s46_s30, 128  ;;  %p1383_p1 = scmp.lt.s32.totalorder %s46_s30, %s46_s30 }
   0x8   :  { %p1379_p0 = scmp.ne.s32.totalorder %s46_s30, %s1378_s17  ;;  %p1384_p2 = scmp.lt.s32.totalorder %s1378_s17, %s1378_s17 }
   0xa   :  { %p1385_p3 = por %p1384_p2, %p1383_p1 }
   0xc   :  { %p1386_p4 = pnand %p1385_p3, %p1379_p0 }
   0xe   :  { %1389 = shalt.err (!%p1386_p4)
}
   0xf   :  { %48 = dma.hbm_to_vmem [thread:$0]  %s1827_s2, 128, %s46_s30, [#allocation6]  }
  0x10   :  { %s1398_s20 = scalar_lea.vmem %s68_s16, 16  ;;  %s1402_s21 = scalar_lea.vmem %s68_s16, 32 }
  0x11   :  { %p1399_p5 = scmp.ne.s32.totalorder %s68_s16, %s1398_s20  ;;  %p1403_p6 = scmp.lt.s32.totalorder %s68_s16, %s68_s16 }
  0x12   :  { %p1404_p7 = scmp.lt.s32.totalorder %s1402_s21, %s1398_s20 }
  0x14   :  { %p1405_p8 = por %p1404_p7, %p1403_p6 }
  0x16   :  { %p1406_p9 = pnand %p1405_p8, %p1399_p5 }
  0x18   :  { %1409 = shalt.err (!%p1406_p9)
}
  0x19   :  { %70 = dma.hbm_to_vmem [thread:$0]  %s1830_s5, 16, %s68_s16, [#allocation9]  }
  0x1a   :  { %s1564_s24 = smov [#allocation11]   ;;  %s1565_s26 = smov [#allocation2]  }
  0x1b   :  { %s93_s25 = sshll.u32 %s1564_s24, 4  ;;  %s30_s27 = sshll.u32 %s1565_s26, 4  ;;  %s94_s25 = int_to_ptr.vmem [resolvable:$true] %s93_s25  ;;  %s31_s27 = int_to_ptr.vmem [resolvable:$true] %s30_s27 }
  0x1c   :  { %s1418_s28 = scalar_lea.vmem %s94_s25, 16  ;;  %s1422_s2 = scalar_lea.vmem %s94_s25, 32 }
  0x1d   :  { %p1419_p10 = scmp.ne.s32.totalorder %s94_s25, %s1418_s28  ;;  %p1423_p11 = scmp.lt.s32.totalorder %s94_s25, %s94_s25 }
  0x1e   :  { %p1424_p12 = scmp.lt.s32.totalorder %s1422_s2, %s1418_s28 }
  0x20   :  { %p1425_p13 = por %p1424_p12, %p1423_p11 }
  0x22   :  { %p1426_p0 = pnand %p1425_p13, %p1419_p10 }
  0x24   :  { %1429 = shalt.err (!%p1426_p0)
}
  0x25   :  { %96 = dma.hbm_to_vmem [thread:$0]  %s1834_s9, 16, %s94_s25, [#allocation12]  }
  0x26   :  { %s1438_s15 = scalar_lea.vmem %s31_s27, 256  ;;  %p1443_p2 = scmp.lt.s32.totalorder %s31_s27, %s31_s27 }
  0x27   :  { %p1439_p1 = scmp.ne.s32.totalorder %s31_s27, %s1438_s15  ;;  %p1444_p3 = scmp.lt.s32.totalorder %s1438_s15, %s1438_s15 }
  0x29   :  { %p1445_p4 = por %p1444_p3, %p1443_p2 }
  0x2b   :  { %p1446_p5 = pnand %p1445_p4, %p1439_p1 }
  0x2d   :  { %1449 = shalt.err (!%p1446_p5)
}
  0x2e   :  { %s1566_s5 = smov 128   ;;  %s1567_s16 = smov 8  }
  0x2f   :  { %36 = dma.hbm_to_vmem [thread:$0]  %s1825_s0, 256, %s31_s27, [#allocation3], %s1566_s5, %s1566_s5, %s1567_s16  }
  0x30   :  { %s1568_s19 = smov [#allocation7]   ;;  %s1569_s21 = smov [#allocation10]  }
  0x31   :  { %s55_s20 = sshll.u32 %s1568_s19, 4  ;;  %s80_s22 = sshll.u32 %s1569_s21, 4  ;;  %s56_s20 = int_to_ptr.vmem [resolvable:$true] %s55_s20  ;;  %s81_s22 = int_to_ptr.vmem [resolvable:$true] %s80_s22 }
  0x32   :  { %s1458_s9 = scalar_lea.vmem %s56_s20, 16  ;;  %s1462_s23 = scalar_lea.vmem %s56_s20, 32 }
  0x33   :  { %p1459_p6 = scmp.ne.s32.totalorder %s56_s20, %s1458_s9  ;;  %p1463_p7 = scmp.lt.s32.totalorder %s56_s20, %s56_s20 }
  0x34   :  { %p1464_p8 = scmp.lt.s32.totalorder %s1462_s23, %s1458_s9 }
  0x36   :  { %p1465_p9 = por %p1464_p8, %p1463_p7 }
  0x38   :  { %p1466_p10 = pnand %p1465_p9, %p1459_p6 }
  0x3a   :  { %1469 = shalt.err (!%p1466_p10)
}
  0x3b   :  { %58 = dma.hbm_to_vmem [thread:$0]  %s1828_s3, 16, %s56_s20, [#allocation6]  }
  0x3c   :  { %s1478_s26 = scalar_lea.vmem %s81_s22, 256  ;;  %p1483_p12 = scmp.lt.s32.totalorder %s81_s22, %s81_s22 }
  0x3d   :  { %p1479_p11 = scmp.ne.s32.totalorder %s81_s22, %s1478_s26  ;;  %p1484_p13 = scmp.lt.s32.totalorder %s1478_s26, %s1478_s26 }
  0x3f   :  { %p1485_p0 = por %p1484_p13, %p1483_p12 }
  0x41   :  { %p1486_p1 = pnand %p1485_p0, %p1479_p11 }
  0x43   :  { %1489 = shalt.err (!%p1486_p1)
}
  0x44   :  { %86 = dma.hbm_to_vmem [thread:$0]  %s1833_s8, 256, %s81_s22, [#allocation9], %s1566_s5, %s1566_s5, %s1567_s16  }
  0x45   :  { %s1570_s28 = smov [#allocation13]   ;;  %s1571_s29 = smov [#allocation14]  }
  0x46   :  { %s105_s2 = sshll.u32 %s1570_s28, 4  ;;  %s117_s30 = sshll.u32 %s1571_s29, 4  ;;  %s106_s2 = int_to_ptr.vmem [resolvable:$true] %s105_s2  ;;  %s118_s30 = int_to_ptr.vmem [resolvable:$true] %s117_s30 }
  0x47   :  { %s1498_s15 = scalar_lea.vmem %s106_s2, 16  ;;  %s1502_s3 = scalar_lea.vmem %s106_s2, 32 }
  0x48   :  { %p1499_p2 = scmp.ne.s32.totalorder %s106_s2, %s1498_s15  ;;  %p1503_p3 = scmp.lt.s32.totalorder %s106_s2, %s106_s2 }
  0x49   :  { %p1504_p4 = scmp.lt.s32.totalorder %s1502_s3, %s1498_s15 }
  0x4b   :  { %p1505_p5 = por %p1504_p4, %p1503_p3 }
  0x4d   :  { %p1506_p6 = pnand %p1505_p5, %p1499_p2 }
  0x4f   :  { %1509 = shalt.err (!%p1506_p6)
}
  0x50   :  { %108 = dma.hbm_to_vmem [thread:$0]  %s1836_s11, 16, %s106_s2, [#allocation12]  }
  0x51   :  { %s1518_s19 = scalar_lea.vmem %s118_s30, 16  ;;  %s1522_s8 = scalar_lea.vmem %s118_s30, 32 }
  0x52   :  { %p1519_p7 = scmp.ne.s32.totalorder %s118_s30, %s1518_s19  ;;  %p1523_p8 = scmp.lt.s32.totalorder %s118_s30, %s118_s30 }
  0x53   :  { %p1524_p9 = scmp.lt.s32.totalorder %s1522_s8, %s1518_s19 }
  0x55   :  { %p1525_p10 = por %p1524_p9, %p1523_p8 }
  0x57   :  { %p1526_p11 = pnand %p1525_p10, %p1519_p7 }
  0x59   :  { %1529 = shalt.err (!%p1526_p11)
}
  0x5a   :  { %120 = dma.hbm_to_vmem [thread:$0]  %s1838_s13, 16, %s118_s30, [#allocation15]  }
  0x5b   :  { %1550 = dma.done.wait [#allocation3], 256  }
  0x5c   :  { %1551 = vsyncadd [#allocation3], 4294967040 }
  0x5d   :  { %1552 = dma.done.wait [#allocation6], 144  }
  0x5e   :  { %1553 = vsyncadd [#allocation6], 4294967152 }
  0x5f   :  { %1554 = dma.done.wait [#allocation9], 272  }
  0x60   :  { %1555 = vsyncadd [#allocation9], 4294967024 }
  0x61   :  { %1556 = dma.done.wait [#allocation12], 32  }
  0x62   :  { %1557 = vsyncadd [#allocation12], 4294967264 }
  0x63   :  { %1558 = dma.done.wait [#allocation15], 16  }
  0x64   :  { %1559 = vsyncadd [#allocation15], 4294967280  ;;  %vm156_vm0 = vcmask 130048   ;;  %v145_v0 = vld [vmem:[#allocation2] sm:$0xff]  ;;  %v146_v1 = vld [vmem:[#allocation2 + $0x8] sm:$0xff]  ;;  %vm562_vm1 = vcmask 195584  }
  0x65   :  { %v157_v2 = vsel %vm156_vm0, %v145_v0, 0.0  ;;  %v160_v3 = vsel %vm156_vm0, %v146_v1, 0.0  ;;  %v148_v19 = vld [vmem:[%s1826_s1 + $0x8] sm:$0xff]  ;;  %v147_v20 = vld [vmem:[%s1826_s1] sm:$0xff]  ;;  %v550_v26 = vld [vmem:[%s1831_s6 + $0x10] sm:$0xff]  ;;  %vm299_vm2 = vcmask 64512  }
  0x66   :  { %158 = vadd.xlane.f32.xlu0 %v157_v2  ;;  %v165_v4 = vadd.f32 %v160_v3, %v157_v2  ;;  %1234 = vmatprep.subr.mxu0 %v148_v19  ;;  %v548_v24 = vld [vmem:[%s1831_s6] sm:$0xff]  ;;  %v549_v25 = vld [vmem:[%s1831_s6 + $0x8] sm:$0xff]  ;;  %v569_v31 = vsel %vm562_vm1, %v550_v26, 0.0  ;;  %v149_v41 = vld [vmem:[#allocation5] sm:$0xff]  ;;  %vm1573_vm3 = vmmov 0   ;;  %vm464_vm4 = vcmask 261120  }
  0x67   :  { %1235 = vmatpush3.msra.mxu0 %v148_v19  ;;  %v563_v28 = vsel %vm562_vm1, %v548_v24, 0.0  ;;  %v566_v29 = vsel %vm562_vm1, %v549_v25, 0.0  ;;  %1241 = vmatprep.subr.mxu1 %v149_v41  ;;  %v154_v61 = vld [vmem:[%s1829_s4 + $0x18] sm:$0xff]  ;;  %v153_v62 = vld [vmem:[%s1829_s4 + $0x10] sm:$0xff]  ;;  %vm731_vm5 = vcmask 1043456   ;;  %vm721_vm6 = vcmask 97280  }
  0x68   :  { %v166_v5 = vrot.slane %v165_v4, 4  ;;  %1236 = vmatprep.subr.mxu0 %v147_v20  ;;  %v575_v30 = vadd.f32 %v566_v29, %v563_v28  ;;  %1242 = vmatpush3.msra.mxu1 %v149_v41  ;;  %v1164_v63 = vld [vmem:[#allocation7] ss:$0 sm:$0xff]  ;;  %v1175_v41 = vld [vmem:[#allocation11] ss:$0 sm:$0xff]  ;;  %vm1141_vm7 = vcmask 24576  }
  0x69   :  { %1237 = vmatpush3.msra.mxu0 %v147_v20 }
  0x6a   :  { %161 = vadd.xlane.f32.xlu0 %v160_v3  ;;  %v167_v6 = vadd.f32 %v166_v5, %v165_v4  ;;  %v576_v32 = vadd.f32 %v575_v30, %v569_v31  ;;  %1253 = vmatprep.subr.mxu0 %v154_v61 }
  0x6c   :  { %v168_v7 = vrot.slane %v167_v6, 2  ;;  %v577_v35 = vrot.slane %v576_v32, 4 }
  0x6e   :  { %v169_v8 = vadd.f32 %v168_v7, %v167_v6  ;;  %564 = vadd.xlane.f32.xlu0 %v563_v28  ;;  %v578_v36 = vadd.f32 %v577_v35, %v576_v32  ;;  %v553_v6 = vld [vmem:[%s1832_s7 + $0x10] sm:$0xff] }
  0x70   :  { %v170_v9 = vrot.slane %v169_v8, 1  ;;  %v579_v37 = vrot.slane %v578_v36, 2 }
  0x72   :  { %v171_v10 = vadd.f32 %v170_v9, %v169_v8  ;;  %570 = vadd.xlane.f32.xlu0 %v569_v31  ;;  %v580_v38 = vadd.f32 %v579_v37, %v578_v36  ;;  %v1572_v8 = vmov 0.0   ;;  %v552_v9 = vld [vmem:[%s1832_s7 + $0x8] sm:$0xff] }
  0x74   :  { %v172_v11 = vmax.f32 %v171_v10, 1.0  ;;  %v581_v39 = vrot.slane %v580_v38, 1  ;;  %v551_v10 = vld [vmem:[%s1832_s7] sm:$0xff] }
  0x76   :  { %1348 = vrsqrt.f32 %v172_v11  ;;  %v582_v40 = vadd.f32 %v581_v39, %v580_v38 }
  0x78   :  { %v583_v42 = vmax.f32 %v582_v40, 1.0 }
  0x83   :  { %v1349_v16 = vpop.eup %1348 }
  0xef   :  { %v159_v12 = vpop.xlane.xlu0 %158 }
  0xf0   :  { %v163_v13 = vmax.f32 %v159_v12, 1.0 }
  0xf2   :  { %1350 = vrsqrt.f32 %v163_v13  ;;  %v152_v13 = vld [vmem:[%s1829_s4 + $0x8] sm:$0xff] }
  0xf3   :  { %v162_v14 = vpop.xlane.xlu0 %161 }
  0xf4   :  { %v164_v15 = vmax.f32 %v162_v14, 1.0  ;;  %v151_v14 = vld [vmem:[%s1829_s4] sm:$0xff] }
  0xf6   :  { %1352 = vrsqrt.f32 %v164_v15 }
  0xf7   :  { %v565_v43 = vpop.xlane.xlu0 %564  ;;  %1354 = vrsqrt.f32 %v583_v42 }
  0xf8   :  { %v572_v45 = vmax.f32 %v565_v43, 1.0 }
  0xfa   :  { %1356 = vrsqrt.f32 %v572_v45 }
  0xfb   :  { %v571_v47 = vpop.xlane.xlu0 %570 }
  0xfc   :  { %v574_v48 = vmax.f32 %v571_v47, 1.0 }
  0xff   :  { %v1351_v17 = vpop.eup %1350 }
 0x100   :  { %v175_v18 = vmul.f32 %v1351_v17, %v145_v0  ;;  %v555_v17 = vld [vmem:[#allocation10 + $0x8] sm:$0xf] }
 0x102   :  { %v178_v21 = vmul.f32 %v1349_v16, %v175_v18  ;;  %v554_v18 = vld [vmem:[#allocation10] sm:$0xff] }
 0x103   :  { %v1353_v22 = vpop.eup %1352 }
 0x104   :  { %180 = vxpose.xlu1.b32.start [1/2] (short) (narrow) %v178_v21, 16  ;;  %v176_v23 = vmul.f32 %v1353_v22, %v146_v1  ;;  %v1355_v49 = vpop.eup %1354 }
 0x106   :  { %v179_v27 = vmul.f32 %v1349_v16, %v176_v23 }
 0x107   :  { %v1357_v50 = vpop.eup %1356 }
 0x108   :  { %181 = vxpose.xlu1.b32.end [2/2] (short) (narrow) %v179_v27, 16  ;;  %v587_v52 = vmul.f32 %v1357_v50, %v548_v24 }
 0x10a   :  { %v591_v54 = vmul.f32 %v1355_v49, %v587_v52 }
 0x10c   :  { %594 = vxpose.xlu0.b32.start [1/3] (short) (narrow) %v591_v54, 24 }
 0x12f   :  { %567 = vadd.xlane.f32.xlu1 %v566_v29 }
 0x180   :  { %v196_v33 = vpop.trf.xlu1 }
 0x181   :  { %1238 = vmatprep.mubr.msk.f32.mxu0 %vm156_vm0, %v196_v33 }
 0x184   :  { %v197_v34 = vpop.trf.xlu1 }
 0x185   :  { %1239 = vmatmul.mubr.msk.f32.vlgmr.msra.gmra.mxu0 %vm156_vm0, %v197_v34 }
 0x186   :  { %1254 = vmatpush3.msra.mxu0 %v154_v61 }
 0x187   :  { %1255 = vmatprep.subr.mxu0 %v153_v62 }
 0x188   :  { %1256 = vmatpush3.msra.mxu0 %v153_v62 }
 0x189   :  { %1257 = vmatprep.subr.mxu0 %v152_v13 }
 0x18a   :  { %1258 = vmatpush3.msra.mxu0 %v152_v13 }
 0x18b   :  { %1259 = vmatprep.subr.mxu0 %v151_v14 }
 0x18c   :  { %1260 = vmatpush3.msra.mxu0 %v151_v14 }
 0x18d   :  { %1279 = vmatprep.subr.mxu0 %v1572_v8 }
 0x1b8   :  { %v568_v44 = vpop.xlane.xlu1 %567 }
 0x1b9   :  { %v573_v46 = vmax.f32 %v568_v44, 1.0 }
 0x1bb   :  { %1358 = vrsqrt.f32 %v573_v46 }
 0x1bc   :  { %1360 = vrsqrt.f32 %v574_v48 }
 0x1c8   :  { %v1359_v51 = vpop.eup %1358 }
 0x1c9   :  { %v588_v53 = vmul.f32 %v1359_v51, %v549_v25  ;;  %v1361_v55 = vpop.eup %1360  ;;  %v1169_v25 = vld [vmem:[#allocation8] ss:$0 sm:$0xff] }
 0x1ca   :  { %v589_v57 = vmul.f32 %v1361_v55, %v550_v26 }
 0x1cb   :  { %v592_v56 = vmul.f32 %v1355_v49, %v588_v53 }
 0x1cc   :  { %v593_v58 = vmul.f32 %v1355_v49, %v589_v57  ;;  %v559_v57 = vld [vmem:[%s1835_s10 + $0x10] sm:$0xff] }
 0x1cd   :  { %595 = vxpose.xlu0.b32.cont [2/3] (short) (narrow) %v592_v56, 24  ;;  %v560_v56 = vld [vmem:[%s1835_s10 + $0x18] sm:$0xff] }
 0x1d1   :  { %596 = vxpose.xlu0.b32.end [3/3] (short) (narrow) %v593_v58, 24  ;;  %v558_v58 = vld [vmem:[%s1835_s10 + $0x8] sm:$0xff] }
 0x245   :  { %v1240_v59 = vpop.f32.mrf.mxu0  ;;  %v1706_v7 = vpop.trf.xlu0 }
 0x247   :  { %v284_v60 = vpop.f32.mrf.mxu0 }
 0x248   :  { %1243 = vmatprep.mubr.msk.f32.mxu1 %vm299_vm2, %v284_v60 }
 0x249   :  { %1244 = vmatmul.mubr.msk.f32.vlgmr.msra.gmra.mxu1 %vm299_vm2, %v1240_v59  ;;  %v1720_v11 = vpop.trf.xlu0  ;;  %v557_v59 = vld [vmem:[%s1835_s10] sm:$0xff] }
 0x24a   :  { %1250 = vmatprep.mubr.msk.f32.mxu1 %vm156_vm0, %v196_v33 }
 0x24d   :  { %v1731_v12 = vpop.trf.xlu0 }
 0x309   :  { %v1245_v0 = vpop.f32.mrf.mxu1 }
 0x30a   :  { %v378_v1 = vadd.f32 %v1245_v0, %v1164_v63 }
 0x30b   :  { %v372_v2 = vpop.f32.mrf.mxu1 }
 0x30c   :  { %v382_v3 = vmax.f32 %v378_v1, 0.0  ;;  %v373_v4 = vadd.f32 %v1164_v63, %v372_v2  ;;  %v1183_v2 = vld [vmem:[#allocation13] ss:$0 sm:$0xff] }
 0x30e   :  { %v381_v5 = vmax.f32 %v373_v4, 0.0  ;;  %1246 = vmatprep.subr.mxu1 %v382_v3 }
 0x30f   :  { %1247 = vmatpush3.msra.mxu1 %v382_v3 }
 0x310   :  { %1248 = vmatprep.subr.mxu1 %v381_v5 }
 0x311   :  { %1249 = vmatpush3.msra.mxu1 %v381_v5 }
 0x312   :  { %1251 = vmatmul.mubr.msk.f32.vlgmr.msra.gmra.mxu1 %vm156_vm0, %v197_v34  ;;  %1264 = vmatprep.subr.mxu1 %v1572_v8 }
 0x313   :  { %1265 = vmatpush3.msra.mxu1 %v553_v6  ;;  %1270 = vmatprep.mubr.msk.f32.mxu1 %vm1573_vm3, %v1572_v8 }
 0x314   :  { %1266 = vmatprep.subr.mxu1 %v1572_v8 }
 0x315   :  { %1267 = vmatpush3.msra.mxu1 %v552_v9 }
 0x316   :  { %1268 = vmatprep.subr.mxu1 %v1572_v8 }
 0x317   :  { %1269 = vmatpush3.msra.mxu1 %v551_v10 }
 0x318   :  { %1271 = vmatmul.mubr.msk.f32.vlgmr.msra.gmra.mxu1 %vm562_vm1, %v1706_v7  ;;  %1292 = vmatprep.subr.mxu1 %v1572_v8 }
 0x319   :  { %1273 = vmatprep.mubr.msk.f32.mxu1 %vm1573_vm3, %v1572_v8 }
 0x31c   :  { %1274 = vmatmul.mubr.msk.f32.gmra.mxu1 %vm562_vm1, %v1720_v11 }
 0x31d   :  { %1276 = vmatprep.mubr.msk.f32.mxu1 %vm1573_vm3, %v1572_v8 }
 0x320   :  { %1277 = vmatmul.mubr.msk.f32.gmra.mxu1 %vm562_vm1, %v1731_v12 }
 0x321   :  { %1298 = vmatprep.mubr.msk.f32.mxu1 %vm1573_vm3, %v1572_v8 }
 0x3d2   :  { %v1252_v15 = vpop.f32.mrf.mxu1 }
 0x3d4   :  { %v449_v16 = vpop.f32.mrf.mxu1 }
 0x3d5   :  { %1261 = vmatprep.mubr.msk.f32.mxu0 %vm464_vm4, %v449_v16 }
 0x3d6   :  { %1262 = vmatmul.mubr.msk.f32.vlgmr.msra.gmra.mxu0 %vm464_vm4, %v1252_v15 }
 0x3d7   :  { %1280 = vmatpush3.msk.msra.mxu0 %vm731_vm5, %v555_v17  ;;  %1283 = vmatprep.mubr.msk.f32.mxu0 %vm1573_vm3, %v1572_v8 }
 0x3d8   :  { %v701_v19 = vpop.f32.mrf.mxu1  ;;  %1281 = vmatprep.subr.mxu0 %v1572_v8 }
 0x3d9   :  { %1282 = vmatpush3.msra.mxu0 %v554_v18 }
 0x3da   :  { %v1272_v20 = vpop.f32.mrf.mxu1  ;;  %1284 = vmatmul.mubr.msk.f32.vlgmr.msra.gmra.mxu0 %vm721_vm6, %v701_v19  ;;  %1307 = vmatprep.subr.mxu0 %v1572_v8 }
 0x3db   :  { %1286 = vmatprep.mubr.msk.f32.mxu0 %vm1573_vm3, %v1572_v8  ;;  %1308 = vmatpush3.msra.mxu0 %v560_v56 }
 0x3dc   :  { %v706_v21 = vpop.f32.mrf.mxu1  ;;  %1309 = vmatprep.subr.mxu0 %v1572_v8 }
 0x3dd   :  { %1310 = vmatpush3.msra.mxu0 %v559_v57 }
 0x3de   :  { %v1275_v22 = vpop.f32.mrf.mxu1  ;;  %1287 = vmatmul.mubr.msk.f32.gmra.mxu0 %vm721_vm6, %v706_v21  ;;  %1311 = vmatprep.subr.mxu0 %v1572_v8 }
 0x3df   :  { %1289 = vmatprep.mubr.msk.f32.mxu0 %vm1573_vm3, %v1572_v8  ;;  %1312 = vmatpush3.msra.mxu0 %v558_v58 }
 0x3e0   :  { %v711_v23 = vpop.f32.mrf.mxu1  ;;  %1313 = vmatprep.subr.mxu0 %v1572_v8 }
 0x3e1   :  { %1314 = vmatpush3.msra.mxu0 %v557_v59 }
 0x3e2   :  { %v1278_v24 = vpop.f32.mrf.mxu1  ;;  %1290 = vmatmul.mubr.msk.f32.gmra.mxu0 %vm721_vm6, %v711_v23 }
 0x3e3   :  { %1315 = vmatprep.mubr.msk.f32.mxu0 %vm1573_vm3, %v1572_v8 }
 0x496   :  { %v1263_v26 = vpop.f32.mrf.mxu0 }
 0x497   :  { %v543_v27 = vadd.f32 %v1263_v26, %v1169_v25 }
 0x498   :  { %v537_v28 = vpop.f32.mrf.mxu0 }
 0x499   :  { %v547_v29 = vmax.f32 %v543_v27, 0.0  ;;  %v538_v30 = vadd.f32 %v1169_v25, %v537_v28 }
 0x49a   :  { %v801_v31 = vpop.f32.mrf.mxu0 }
 0x49b   :  { %v546_v32 = vmax.f32 %v538_v30, 0.0  ;;  %v997_v34 = vsel %vm464_vm4, %v547_v29, 0.0  ;;  %v802_v47 = vadd.f32 %v1175_v41, %v801_v31 }
 0x49c   :  { %v1285_v33 = vpop.f32.mrf.mxu0 }
 0x49d   :  { %v996_v35 = vsel %vm464_vm4, %v546_v32, 0.0  ;;  %v815_v52 = vmax.f32 %v802_v47, 0.0 }
 0x49e   :  { %v998_v36 = vadd.f32 %v997_v34, %v996_v35  ;;  %v806_v37 = vpop.f32.mrf.mxu0 }
 0x49f   :  { %v807_v43 = vadd.f32 %v1175_v41, %v806_v37 }
 0x4a0   :  { %v999_v38 = vrot.slane %v998_v36, 4  ;;  %v1288_v39 = vpop.f32.mrf.mxu0 }
 0x4a1   :  { %v816_v50 = vmax.f32 %v807_v43, 0.0 }
 0x4a2   :  { %v1000_v40 = vadd.f32 %v999_v38, %v998_v36  ;;  %v811_v42 = vpop.f32.mrf.mxu0 }
 0x4a3   :  { %v812_v44 = vadd.f32 %v1175_v41, %v811_v42 }
 0x4a4   :  { %v1291_v45 = vpop.f32.mrf.mxu0  ;;  %v1001_v46 = vrot.slane %v1000_v40, 2 }
 0x4a5   :  { %v817_v48 = vmax.f32 %v812_v44, 0.0 }
 0x4a6   :  { %v1002_v49 = vadd.f32 %v1001_v46, %v1000_v40 }
 0x4a7   :  { %1293 = vmatpush3.msra.mxu1 %v817_v48 }
 0x4a8   :  { %1294 = vmatprep.subr.mxu1 %v1572_v8  ;;  %v1003_v51 = vrot.slane %v1002_v49, 1 }
 0x4a9   :  { %1295 = vmatpush3.msra.mxu1 %v816_v50  ;;  %v1066_v50 = vld [vmem:[%s1837_s12 + $0x18] sm:$0xff] }
 0x4aa   :  { %1296 = vmatprep.subr.mxu1 %v1572_v8  ;;  %v1004_v53 = vadd.f32 %v1003_v51, %v1002_v49  ;;  %v1065_v51 = vld [vmem:[%s1837_s12 + $0x10] sm:$0xff] }
 0x4ab   :  { %1297 = vmatpush3.msra.mxu1 %v815_v52  ;;  %v1064_v52 = vld [vmem:[%s1837_s12 + $0x8] sm:$0xff] }
 0x4ac   :  { %1299 = vmatmul.mubr.msk.f32.vlgmr.msra.gmra.mxu1 %vm562_vm1, %v1706_v7  ;;  %v1006_v54 = vmul.f32 0.0625, %v1004_v53  ;;  %1324 = vmatprep.subr.mxu1 %v1572_v8  ;;  %v1063_v53 = vld [vmem:[%s1837_s12] sm:$0xff]  ;;  %s1574_s12 = smov [#allocation16]  }
 0x4ad   :  { %1301 = vmatprep.mubr.msk.f32.mxu1 %vm1573_vm3, %v1572_v8  ;;  %1325 = vmatpush3.msra.mxu1 %v1066_v50  ;;  %s1149_s6 = sshll.u32 %s1574_s12, 4  ;;  %s1150_s6 = int_to_ptr.vmem [resolvable:$true] %s1149_s6 }
 0x4ae   :  { %v1018_v55 = vsel %vm464_vm4, %v1006_v54, 0.0  ;;  %1326 = vmatprep.subr.mxu1 %v1572_v8  ;;  %s1530_s0 = scalar_lea.vmem %s1150_s6, 16  ;;  %s1534_s27 = scalar_lea.vmem %s1150_s6, 32 }
 0x4af   :  { %1019 = vadd.xlane.f32.xlu1 %v1018_v55  ;;  %1327 = vmatpush3.msra.mxu1 %v1065_v51  ;;  %p1531_p12 = scmp.ne.s32.totalorder %s1150_s6, %s1530_s0  ;;  %p1535_p13 = scmp.lt.s32.totalorder %s1150_s6, %s1150_s6 }
 0x4b0   :  { %1302 = vmatmul.mubr.msk.f32.gmra.mxu1 %vm562_vm1, %v1720_v11  ;;  %1328 = vmatprep.subr.mxu1 %v1572_v8  ;;  %p1536_p0 = scmp.lt.s32.totalorder %s1534_s27, %s1530_s0 }
 0x4b1   :  { %1304 = vmatprep.mubr.msk.f32.mxu1 %vm1573_vm3, %v1572_v8  ;;  %1329 = vmatpush3.msra.mxu1 %v1064_v52 }
 0x4b2   :  { %1330 = vmatprep.subr.mxu1 %v1572_v8  ;;  %p1537_p1 = por %p1536_p0, %p1535_p13 }
 0x4b3   :  { %1331 = vmatpush3.msra.mxu1 %v1063_v53 }
 0x4b4   :  { %1305 = vmatmul.mubr.msk.f32.gmra.mxu1 %vm562_vm1, %v1731_v12  ;;  %p1538_p2 = pnand %p1537_p1, %p1531_p12 }
 0x4b5   :  { %1332 = vmatprep.mubr.msk.f32.mxu1 %vm1573_vm3, %v1572_v8 }
 0x538   :  { %v1020_v22 = vpop.xlane.xlu1 %1019 }
 0x539   :  { %v1021_v24 = vmul.f32 0.03125, %v1020_v22 }
 0x53b   :  { %v1022_v27 = vsub.f32 %v1006_v54, %v1021_v24 }
 0x53d   :  { %v1023_v31 = vmul.f32 %v1022_v27, %v1022_v27 }
 0x53f   :  { %v1024_v32 = vsel %vm464_vm4, %v1023_v31, 0.0 }
 0x56c   :  { %v884_v60 = vpop.f32.mrf.mxu1 }
 0x56d   :  { %1316 = vmatmul.mubr.msk.f32.vlgmr.msra.gmra.mxu0 %vm464_vm4, %v884_v60 }
 0x56e   :  { %v1300_v61 = vpop.f32.mrf.mxu1  ;;  %1318 = vmatprep.mubr.msk.f32.mxu0 %vm1573_vm3, %v1572_v8 }
 0x570   :  { %v889_v62 = vpop.f32.mrf.mxu1 }
 0x571   :  { %1319 = vmatmul.mubr.msk.f32.gmra.mxu0 %vm464_vm4, %v889_v62 }
 0x572   :  { %v1303_v63 = vpop.f32.mrf.mxu1  ;;  %1321 = vmatprep.mubr.msk.f32.mxu0 %vm1573_vm3, %v1572_v8 }
 0x574   :  { %v894_v0 = vpop.f32.mrf.mxu1 }
 0x575   :  { %1322 = vmatmul.mubr.msk.f32.gmra.mxu0 %vm464_vm4, %v894_v0 }
 0x576   :  { %v1306_v1 = vpop.f32.mrf.mxu1 }
 0x62d   :  { %v979_v3 = vpop.f32.mrf.mxu0 }
 0x62e   :  { %v980_v5 = vadd.f32 %v1183_v2, %v979_v3 }
 0x62f   :  { %v1317_v4 = vpop.f32.mrf.mxu0 }
 0x630   :  { %v993_v10 = vmax.f32 %v980_v5, 0.0 }
 0x631   :  { %v984_v6 = vpop.f32.mrf.mxu0 }
 0x632   :  { %v985_v7 = vadd.f32 %v1183_v2, %v984_v6  ;;  %v1007_v16 = vsel %vm464_vm4, %v993_v10, -inf }
 0x633   :  { %v1320_v9 = vpop.f32.mrf.mxu0 }
 0x634   :  { %v994_v11 = vmax.f32 %v985_v7, 0.0 }
 0x635   :  { %v989_v12 = vpop.f32.mrf.mxu0 }
 0x636   :  { %v1008_v13 = vsel %vm464_vm4, %v994_v11, -inf  ;;  %v990_v14 = vadd.f32 %v1183_v2, %v989_v12  ;;  %v1067_v2 = vld [vmem:[#allocation14] sm:$0x1] }
 0x637   :  { %v1323_v15 = vpop.f32.mrf.mxu0  ;;  %v1010_v18 = vmax.f32 %v1007_v16, %v1008_v13 }
 0x638   :  { %v995_v17 = vmax.f32 %v990_v14, 0.0 }
 0x63a   :  { %v1009_v19 = vsel %vm464_vm4, %v995_v17, -inf }
 0x63b   :  { %v1011_v20 = vmax.f32 %v1010_v18, %v1009_v19 }
 0x63d   :  { %v1012_v21 = vrot.slane %v1011_v20, 4 }
 0x63f   :  { %v1013_v23 = vmax.f32 %v1011_v20, %v1012_v21 }
 0x641   :  { %v1014_v25 = vrot.slane %v1013_v23, 2 }
 0x643   :  { %v1015_v26 = vmax.f32 %v1013_v23, %v1014_v25 }
 0x645   :  { %v1016_v28 = vrot.slane %v1015_v26, 1 }
 0x647   :  { %v1017_v29 = vmax.f32 %v1015_v26, %v1016_v28 }
 0x649   :  { %v1040_v30 = vsel %vm464_vm4, %v1017_v29, 0.0 }
 0x64a   :  { %1041 = vadd.xlane.f32.xlu1 %v1040_v30 }
 0x64e   :  { %1025 = vadd.xlane.f32.xlu1 %v1024_v32 }
 0x6d3   :  { %v1042_v33 = vpop.xlane.xlu1 %1041 }
 0x6d4   :  { %v1043_v34 = vmul.f32 0.03125, %v1042_v33 }
 0x6d6   :  { %v1044_v35 = vsub.f32 %v1017_v29, %v1043_v34 }
 0x6d7   :  { %v1026_v36 = vpop.xlane.xlu1 %1025 }
 0x6d8   :  { %v1027_v37 = vmul.f32 0.032258064, %v1026_v36  ;;  %v1045_v38 = vmul.f32 %v1044_v35, %v1044_v35 }
 0x6da   :  { %1362 = vrsqrt.f32 %v1027_v37  ;;  %v1046_v39 = vsel %vm464_vm4, %v1045_v38, 0.0 }
 0x6db   :  { %1047 = vadd.xlane.f32.xlu1 %v1046_v39 }
 0x6e7   :  { %v1363_v40 = vpop.eup %1362 }
 0x6e8   :  { %v1029_v41 = vmul.f32 %v1363_v40, %v1022_v27 }
 0x6ea   :  { %v1030_v42 = vsel %vm464_vm4, %v1029_v41, inf  ;;  %v1033_v43 = vsel %vm464_vm4, %v1029_v41, -inf }
 0x6eb   :  { %1031 = vmin.xlane.f32.xlu1 %v1030_v42 }
 0x6ef   :  { %1034 = vmax.xlane.f32.xlu1 %v1033_v43 }
 0x764   :  { %v1048_v44 = vpop.xlane.xlu1 %1047 }
 0x765   :  { %v1049_v45 = vmul.f32 0.032258064, %v1048_v44 }
 0x767   :  { %1364 = vrsqrt.f32 %v1049_v45 }
 0x774   :  { %v1365_v46 = vpop.eup %1364  ;;  %v1032_v54 = vpop.xlane.xlu1 %1031 }
 0x775   :  { %v1051_v47 = vmul.f32 %v1365_v46, %v1044_v35  ;;  %v1036_v61 = vsub.f32 %v1029_v41, %v1032_v54 }
 0x777   :  { %v1055_v48 = vsel %vm464_vm4, %v1051_v47, -inf  ;;  %v1052_v49 = vsel %vm464_vm4, %v1051_v47, inf }
 0x778   :  { %1056 = vmax.xlane.f32.xlu1 %v1055_v48  ;;  %1053 = vmin.xlane.f32.xlu0 %v1052_v49  ;;  %v1035_v55 = vpop.xlane.xlu1 %1034 }
 0x779   :  { %v1037_v56 = vsub.f32 %v1035_v55, %v1032_v54 }
 0x77b   :  { %1366 = vrcp.f32 %v1037_v56 }
 0x788   :  { %v1367_v60 = vpop.eup %1366 }
 0x789   :  { %v1039_v0 = vmul.f32 %v1367_v60, %v1036_v61 }
 0x801   :  { %v1054_v57 = vpop.xlane.xlu0 %1053  ;;  %v1057_v58 = vpop.xlane.xlu1 %1056 }
 0x802   :  { %v1059_v59 = vsub.f32 %v1057_v58, %v1054_v57  ;;  %v1058_v62 = vsub.f32 %v1051_v47, %v1054_v57 }
 0x804   :  { %1368 = vrcp.f32 %v1059_v59 }
 0x811   :  { %v1369_v63 = vpop.eup %1368 }
 0x812   :  { %v1061_v1 = vmul.f32 %v1369_v63, %v1058_v62 }
 0x814   :  { %v1062_v8 = vadd.f32 %v1061_v1, %v1039_v0 }
 0x816   :  { %1333 = vmatmul.mubr.msk.f32.vlgmr.msra.gmra.mxu1 %vm464_vm4, %v1062_v8 }
 0x8d6   :  { %v1137_v3 = vpop.f32.mrf.mxu1 }
 0x8d7   :  { %v1138_v4 = vadd.f32 %v1137_v3, %v1067_v2 }
 0x8d8   :  { %v1334_v5 = vpop.f32.mrf.mxu1 }
 0x8d9   :  { %1142 = vst.msk [vmem:[#allocation16] sm:$0x1] %vm1141_vm7, %v1138_v4 }
 0x8da   :  { %1541 = shalt.err (!%p1538_p2)
}
 0x8db   :  { %1152 = dma.vmem_to_hbm [thread:$0]  %s1150_s6, 16, %s1839_s14, [#allocation4]  }
 0x8dc   :  { %1560 = dma.done.wait [#allocation4], 16  }
 0x8dd   :  { %1561 = vsyncadd [#allocation4], 4294967280 }
 0x8de   :  { %1156 = vsyncpa [#allocation3], 1 }
 0x8df   :  { %1157 = vsyncpa [#allocation6], 1 }
 0x8e0   :  { %1158 = vsyncpa [#allocation9], 1 }
 0x8e1   :  { %1159 = vsyncpa [#allocation12], 1 }
 0x8e2   :  { %1160 = vsyncpa [#allocation15], 1 }
 0x8e3   :  { %1161 = vsyncpa [#allocation4], 1 }

</bundles_post_ra>
